<compile_context>
chip_gen: v6e
topology: v6e:2x2x1
jax: 0.10.0
libtpu: 0.0.40
codegen_flags: <defaults>
</compile_context>

<pallas_src>
import functools

import jax
import jax.numpy as jnp
from jax.experimental import pallas as pl
from jax.experimental.pallas import tpu as pltpu


def _relgraphconv_kernel(coeff_ref, a_ref, xsrc_ref, xdst_ref, basis_ref,
                         lw_ref, b_ref, o_ref, xb_ref):
    """grid = (dst tile i [parallel], src tile k [arbitrary], relation r [arbitrary])."""
    k = pl.program_id(1)
    r = pl.program_id(2)
    num_bases = xb_ref.shape[0]

    # Stage X_src @ basis_b once per (dst tile, src tile); reused across all R relations.
    @pl.when(r == 0)
    def _():
        for b in range(num_bases):
            xb_ref[b] = jnp.dot(xsrc_ref[...], basis_ref[b],
                                preferred_element_type=jnp.float32)

    # First reduction step of this dst tile: seed the resident output block with the
    # self-loop message + bias instead of zeros (no extra epilogue matmul, no acc scratch).
    @pl.when((k == 0) & (r == 0))
    def _():
        o_ref[...] = (
            jnp.dot(xdst_ref[...], lw_ref[...], preferred_element_type=jnp.float32)
            + b_ref[...]
        )

    # X @ W_r = sum_b coeff[r, b] * (X @ basis_b)  -- cheap VPU scale-adds, no per-rel matmul.
    xw = coeff_ref[r, 0] * xb_ref[0]
    for b in range(1, num_bases):
        xw = xw + coeff_ref[r, b] * xb_ref[b]

    # Right-normalized aggregation for relation r, accumulated into the resident output block.
    o_ref[...] += jnp.dot(a_ref[...], xw.astype(jnp.bfloat16),
                          preferred_element_type=jnp.float32)

    # Epilogue at the last reduction step: ReLU (dropout p=0.0 is identity).
    @pl.when((k == pl.num_programs(1) - 1) & (r == pl.num_programs(2) - 1))
    def _():
        o_ref[...] = jnp.maximum(o_ref[...], 0.0)


@functools.partial(jax.jit, static_argnames=("tile_dst", "tile_src"))
def rel_graph_conv_layer(a_norm, x, basis, coeff, loop_weight, h_bias,
                         *, tile_dst=128, tile_src=128):
    """a_norm: (R, N, N) right-normalized adjacency; x: (N, Fin); basis: (B, Fin, Fout);
       coeff: (R, B); loop_weight: (Fin, Fout); h_bias: (1, Fout).  Returns (N, Fout) f32."""
    R, N, _ = a_norm.shape
    B, Fin, Fout = basis.shape
    assert N % tile_dst == 0 and N % tile_src == 0, "N must be divisible by the tile sizes"
    assert Fout % 128 == 0, "keep Fout lane-dense (multiple of 128); pad if smaller"

    # bf16 streaming inputs (halves A/X HBM traffic, native MXU rate); f32 accumulation in-kernel.
    a_bf = a_norm.astype(jnp.bfloat16)
    x_bf = x.astype(jnp.bfloat16)
    basis_bf = basis.astype(jnp.bfloat16)
    lw_bf = loop_weight.astype(jnp.bfloat16)
    coeff_f32 = coeff.astype(jnp.float32)
    bias_f32 = h_bias.reshape(1, Fout).astype(jnp.float32)

    n_dst = N // tile_dst
    n_src = N // tile_src

    # Explicit VMEM budget: double-buffered streams + resident blocks + XB scratch, with headroom.
    vmem_est = (
        2 * tile_dst * tile_src * 2      # A tile (bf16)
        + 2 * tile_src * Fin * 2         # X src tile (bf16)
        + 2 * tile_dst * Fin * 2         # X dst tile (bf16)
        + B * Fin * Fout * 2             # basis (resident)
        + Fin * Fout * 2                 # loop weight (resident)
        + Fout * 4                       # bias
        + 2 * tile_dst * Fout * 4        # resident f32 output accumulator
        + B * tile_src * Fout * 4        # XB staging scratch (f32)
    )
    vmem_limit = int(min(max(4 * vmem_est, 32 * 1024 * 1024), 64 * 1024 * 1024))

    return pl.pallas_call(
        _relgraphconv_kernel,
        out_shape=jax.ShapeDtypeStruct((N, Fout), jnp.float32),
        grid_spec=pltpu.PrefetchScalarGridSpec(
            num_scalar_prefetch=0,
            grid=(n_dst, n_src, R),
            in_specs=[
                pl.BlockSpec(memory_space=pltpu.MemorySpace.SMEM),             # coeff (R, B)
                pl.BlockSpec((pl.Squeezed(), tile_dst, tile_src),
                             lambda i, k, r: (r, i, k)),                       # A_r tile
                pl.BlockSpec((tile_src, Fin), lambda i, k, r: (k, 0)),         # X (src rows)
                pl.BlockSpec((tile_dst, Fin), lambda i, k, r: (i, 0)),         # X (dst rows)
                pl.BlockSpec((B, Fin, Fout), lambda i, k, r: (0, 0, 0)),       # basis (resident)
                pl.BlockSpec((Fin, Fout), lambda i, k, r: (0, 0)),             # loop weight
                pl.BlockSpec((1, Fout), lambda i, k, r: (0, 0)),               # bias
            ],
            out_specs=pl.BlockSpec((tile_dst, Fout), lambda i, k, r: (i, 0)),
            scratch_shapes=[pltpu.VMEM((B, tile_src, Fout), jnp.float32)],
        ),
        compiler_params=pltpu.CompilerParams(
            dimension_semantics=("parallel", "arbitrary", "arbitrary"),
            vmem_limit_bytes=vmem_limit,
        ),
    )(coeff_f32, a_bf, x_bf, x_bf, basis_bf, lw_bf, bias_f32)


def _xavier_uniform(key, shape, gain):
    # nn.init.xavier_uniform_ on (..., fan_in, fan_out): bound = gain*sqrt(6/(fan_in+fan_out))
    fan_in, fan_out = shape[-2], shape[-1]
    bound = gain * (6.0 / (fan_in + fan_out)) ** 0.5
    return jax.random.uniform(key, shape, jnp.float32, -bound, bound)


if __name__ == "__main__":
    key = jax.random.PRNGKey(0)

    # Small but tile-representative shapes: (8,128)-aligned tiles, lane-dense Fout.
    N = 256
    IN_FEAT = 128
    OUT_FEAT = 128
    REL_NAMES = ["rel_a", "rel_b", "rel_c"]
    R = len(REL_NAMES)
    NUM_BASES = 2                      # num_bases < len(rel_names)  -> use_basis = True

    gain = 2.0 ** 0.5                  # nn.init.calculate_gain('relu')
    k_adj, k_basis, k_coef, k_loop, k_x = jax.random.split(key, 5)

    # Synthetic dense graph: A[r, dst, src] in {0,1}; GraphConv norm='right' -> divide by in-degree.
    adj = (jax.random.uniform(k_adj, (R, N, N)) < 0.3).astype(jnp.float32)
    in_deg = jnp.clip(adj.sum(axis=2, keepdims=True), 1.0, None)
    a_norm = adj / in_deg

    # Parameters (WeightBasis: W_r = sum_b coeff[r, b] * basis_b).
    basis = _xavier_uniform(k_basis, (NUM_BASES, IN_FEAT, OUT_FEAT), gain)
    coeff = _xavier_uniform(k_coef, (R, NUM_BASES), gain)
    loop_weight = _xavier_uniform(k_loop, (IN_FEAT, OUT_FEAT), gain)
    h_bias = jnp.zeros((1, OUT_FEAT), jnp.float32)   # nn.init.zeros_

    x = jax.random.normal(k_x, (N, IN_FEAT), jnp.float32)

    # --- run kernel ---
    out = rel_graph_conv_layer(a_norm, x, basis, coeff, loop_weight, h_bias,
                               tile_dst=128, tile_src=128)
    out = jax.block_until_ready(out)

    # --- pure-JAX reference with the same bf16 input quantization / f32 accumulation ---
    a_q = a_norm.astype(jnp.bfloat16).astype(jnp.float32)
    x_q = x.astype(jnp.bfloat16).astype(jnp.float32)
    basis_q = basis.astype(jnp.bfloat16).astype(jnp.float32)
    lw_q = loop_weight.astype(jnp.bfloat16).astype(jnp.float32)

    xb = jnp.stack([x_q @ basis_q[b] for b in range(NUM_BASES)])      # (B, N, Fout)
    ref = x_q @ lw_q + h_bias
    for r in range(R):
        xw = coeff[r, 0] * xb[0]
        for b in range(1, NUM_BASES):
            xw = xw + coeff[r, b] * xb[b]
        ref = ref + a_q[r] @ xw.astype(jnp.bfloat16).astype(jnp.float32)
    ref = jnp.maximum(ref, 0.0)

    assert jnp.allclose(out, ref, atol=2e-2, rtol=2e-2), "mismatch vs reference"
    print("KERNEL_OK")
</pallas_src>

<mosaic_0001>
module attributes {stable_mosaic.version = 11 : i64} {
  func.func @_relgraphconv_kernel(%arg0: i32, %arg1: i32, %arg2: i32, %arg3: memref<3x2xf32, #tpu.memory_space<smem>>, %arg4: memref<1x128x128xbf16, #tpu.memory_space<vmem>>, %arg5: memref<128x128xbf16, #tpu.memory_space<vmem>>, %arg6: memref<128x128xbf16, #tpu.memory_space<vmem>>, %arg7: memref<2x128x128xbf16, #tpu.memory_space<vmem>>, %arg8: memref<128x128xbf16, #tpu.memory_space<vmem>>, %arg9: memref<1x128xf32, #tpu.memory_space<vmem>>, %arg10: memref<128x128xf32, #tpu.memory_space<vmem>>, %arg11: memref<2x128x128xf32, #tpu.memory_space<vmem>>) attributes {dimension_semantics = [#tpu.dimension_semantics<parallel>, #tpu.dimension_semantics<arbitrary>, #tpu.dimension_semantics<arbitrary>], iteration_bounds = array<i64: 2, 2, 3>, scalar_prefetch = 0 : i64, scratch_operands = 1 : i64, tpu.core_type = #tpu.core_type<tc>, window_params = [{transform_indices = @transform_0, window_bounds = array<i64: 3, 2>}, {transform_indices = @transform_1, window_bounds = array<i64: 1, 128, 128>}, {transform_indices = @transform_2, window_bounds = array<i64: 128, 128>}, {transform_indices = @transform_3, window_bounds = array<i64: 128, 128>}, {pipeline_mode = #tpu.pipeline_mode<synchronous>, transform_indices = @transform_4, window_bounds = array<i64: 2, 128, 128>}, {pipeline_mode = #tpu.pipeline_mode<synchronous>, transform_indices = @transform_5, window_bounds = array<i64: 128, 128>}, {pipeline_mode = #tpu.pipeline_mode<synchronous>, transform_indices = @transform_6, window_bounds = array<i64: 1, 128>}, {transform_indices = @transform_7, window_bounds = array<i64: 128, 128>}]} {
    %c0_i32 = arith.constant 0 : i32
    %0 = arith.cmpi eq, %arg2, %c0_i32 : i32
    %1 = arith.extui %0 : i1 to i32
    %c0_i32_0 = arith.constant 0 : i32
    %2 = arith.cmpi ne, %1, %c0_i32_0 : i32
    scf.if %2 {
      %c0_18 = arith.constant 0 : index
      %c0_19 = arith.constant 0 : index
      %33 = vector.load %arg5[%c0_18, %c0_19] : memref<128x128xbf16, #tpu.memory_space<vmem>>, vector<128x128xbf16>
      %c0_20 = arith.constant 0 : index
      %c0_21 = arith.constant 0 : index
      %c0_22 = arith.constant 0 : index
      %34 = vector.load %arg7[%c0_20, %c0_21, %c0_22] : memref<2x128x128xbf16, #tpu.memory_space<vmem>>, vector<1x128x128xbf16>
      %35 = vector.shape_cast %34 : vector<1x128x128xbf16> to vector<128x128xbf16>
      %cst_23 = arith.constant dense<0.000000e+00> : vector<128x128xf32>
      %36 = tpu.matmul %33, %35, %cst_23 {dimension_numbers = #tpu.dot_dimension_numbers<[1], [0], [0], [1], [0, 0, 1, 1], [], []>} : vector<128x128xbf16>, vector<128x128xbf16>, vector<128x128xf32> -> vector<128x128xf32>
      %c0_24 = arith.constant 0 : index
      %c0_25 = arith.constant 0 : index
      %c0_26 = arith.constant 0 : index
      %37 = vector.load %arg11[%c0_24, %c0_25, %c0_26] : memref<2x128x128xf32, #tpu.memory_space<vmem>>, vector<1x128x128xf32>
      %38 = vector.shape_cast %37 : vector<1x128x128xf32> to vector<128x128xf32>
      %39 = vector.shape_cast %36 : vector<128x128xf32> to vector<1x128x128xf32>
      tpu.vector_store %arg11[%c0_24, %c0_25, %c0_26], %39 {strides = array<i32>} : memref<2x128x128xf32, #tpu.memory_space<vmem>>, vector<1x128x128xf32>,
      %c0_27 = arith.constant 0 : index
      %c0_28 = arith.constant 0 : index
      %40 = vector.load %arg5[%c0_27, %c0_28] : memref<128x128xbf16, #tpu.memory_space<vmem>>, vector<128x128xbf16>
      %c1_29 = arith.constant 1 : index
      %c0_30 = arith.constant 0 : index
      %c0_31 = arith.constant 0 : index
      %41 = vector.load %arg7[%c1_29, %c0_30, %c0_31] : memref<2x128x128xbf16, #tpu.memory_space<vmem>>, vector<1x128x128xbf16>
      %42 = vector.shape_cast %41 : vector<1x128x128xbf16> to vector<128x128xbf16>
      %cst_32 = arith.constant dense<0.000000e+00> : vector<128x128xf32>
      %43 = tpu.matmul %40, %42, %cst_32 {dimension_numbers = #tpu.dot_dimension_numbers<[1], [0], [0], [1], [0, 0, 1, 1], [], []>} : vector<128x128xbf16>, vector<128x128xbf16>, vector<128x128xf32> -> vector<128x128xf32>
      %c1_33 = arith.constant 1 : index
      %c0_34 = arith.constant 0 : index
      %c0_35 = arith.constant 0 : index
      %44 = vector.load %arg11[%c1_33, %c0_34, %c0_35] : memref<2x128x128xf32, #tpu.memory_space<vmem>>, vector<1x128x128xf32>
      %45 = vector.shape_cast %44 : vector<1x128x128xf32> to vector<128x128xf32>
      %46 = vector.shape_cast %43 : vector<128x128xf32> to vector<1x128x128xf32>
      tpu.vector_store %arg11[%c1_33, %c0_34, %c0_35], %46 {strides = array<i32>} : memref<2x128x128xf32, #tpu.memory_space<vmem>>, vector<1x128x128xf32>,
    } else {
    }
    %c0_i32_1 = arith.constant 0 : i32
    %3 = arith.cmpi eq, %arg1, %c0_i32_1 : i32
    %c0_i32_2 = arith.constant 0 : i32
    %4 = arith.cmpi eq, %arg2, %c0_i32_2 : i32
    %5 = arith.andi %3, %4 : i1
    %6 = arith.extui %5 : i1 to i32
    %c0_i32_3 = arith.constant 0 : i32
    %7 = arith.cmpi ne, %6, %c0_i32_3 : i32
    scf.if %7 {
      %c0_18 = arith.constant 0 : index
      %c0_19 = arith.constant 0 : index
      %33 = vector.load %arg6[%c0_18, %c0_19] : memref<128x128xbf16, #tpu.memory_space<vmem>>, vector<128x128xbf16>
      %c0_20 = arith.constant 0 : index
      %c0_21 = arith.constant 0 : index
      %34 = vector.load %arg8[%c0_20, %c0_21] : memref<128x128xbf16, #tpu.memory_space<vmem>>, vector<128x128xbf16>
      %cst_22 = arith.constant dense<0.000000e+00> : vector<128x128xf32>
      %35 = tpu.matmul %33, %34, %cst_22 {dimension_numbers = #tpu.dot_dimension_numbers<[1], [0], [0], [1], [0, 0, 1, 1], [], []>} : vector<128x128xbf16>, vector<128x128xbf16>, vector<128x128xf32> -> vector<128x128xf32>
      %c0_23 = arith.constant 0 : index
      %c0_24 = arith.constant 0 : index
      %36 = vector.load %arg9[%c0_23, %c0_24] : memref<1x128xf32, #tpu.memory_space<vmem>>, vector<1x128xf32>
      %37 = vector.broadcast %36 : vector<1x128xf32> to vector<128x128xf32>
      %38 = arith.addf %35, %37 : vector<128x128xf32>
      %c0_25 = arith.constant 0 : index
      %c0_26 = arith.constant 0 : index
      %39 = vector.load %arg10[%c0_25, %c0_26] : memref<128x128xf32, #tpu.memory_space<vmem>>, vector<128x128xf32>
      tpu.vector_store %arg10[%c0_25, %c0_26], %38 {strides = array<i32>} : memref<128x128xf32, #tpu.memory_space<vmem>>, vector<128x128xf32>,
    } else {
    }
    %8 = arith.index_cast %arg2 : i32 to index
    %c0 = arith.constant 0 : index
    %9 = memref.load %arg3[%8, %c0] : memref<3x2xf32, #tpu.memory_space<smem>>
    %c0_4 = arith.constant 0 : index
    %c0_5 = arith.constant 0 : index
    %c0_6 = arith.constant 0 : index
    %10 = vector.load %arg11[%c0_4, %c0_5, %c0_6] : memref<2x128x128xf32, #tpu.memory_space<vmem>>, vector<1x128x128xf32>
    %11 = vector.shape_cast %10 : vector<1x128x128xf32> to vector<128x128xf32>
    %12 = vector.broadcast %9 : f32 to vector<128x128xf32>
    %13 = arith.mulf %12, %11 : vector<128x128xf32>
    %14 = arith.index_cast %arg2 : i32 to index
    %c1 = arith.constant 1 : index
    %15 = memref.load %arg3[%14, %c1] : memref<3x2xf32, #tpu.memory_space<smem>>
    %c1_7 = arith.constant 1 : index
    %c0_8 = arith.constant 0 : index
    %c0_9 = arith.constant 0 : index
    %16 = vector.load %arg11[%c1_7, %c0_8, %c0_9] : memref<2x128x128xf32, #tpu.memory_space<vmem>>, vector<1x128x128xf32>
    %17 = vector.shape_cast %16 : vector<1x128x128xf32> to vector<128x128xf32>
    %18 = vector.broadcast %15 : f32 to vector<128x128xf32>
    %19 = arith.mulf %18, %17 : vector<128x128xf32>
    %20 = arith.addf %13, %19 : vector<128x128xf32>
    %c0_10 = arith.constant 0 : index
    %c0_11 = arith.constant 0 : index
    %21 = vector.load %arg10[%c0_10, %c0_11] : memref<128x128xf32, #tpu.memory_space<vmem>>, vector<128x128xf32>
    %c0_12 = arith.constant 0 : index
    %c0_13 = arith.constant 0 : index
    %c0_14 = arith.constant 0 : index
    %22 = vector.load %arg4[%c0_12, %c0_13, %c0_14] : memref<1x128x128xbf16, #tpu.memory_space<vmem>>, vector<1x128x128xbf16>
    %23 = vector.shape_cast %22 : vector<1x128x128xbf16> to vector<128x128xbf16>
    %24 = arith.truncf %20 : vector<128x128xf32> to vector<128x128xbf16>
    %cst = arith.constant dense<0.000000e+00> : vector<128x128xf32>
    %25 = tpu.matmul %23, %24, %cst {dimension_numbers = #tpu.dot_dimension_numbers<[1], [0], [0], [1], [0, 0, 1, 1], [], []>} : vector<128x128xbf16>, vector<128x128xbf16>, vector<128x128xf32> -> vector<128x128xf32>
    %26 = arith.addf %21, %25 : vector<128x128xf32>
    %c0_15 = arith.constant 0 : index
    %c0_16 = arith.constant 0 : index
    %27 = vector.load %arg10[%c0_15, %c0_16] : memref<128x128xf32, #tpu.memory_space<vmem>>, vector<128x128xf32>
    tpu.vector_store %arg10[%c0_15, %c0_16], %26 {strides = array<i32>} : memref<128x128xf32, #tpu.memory_space<vmem>>, vector<128x128xf32>,
    %c1_i32 = arith.constant 1 : i32
    %28 = arith.cmpi eq, %arg1, %c1_i32 : i32
    %c2_i32 = arith.constant 2 : i32
    %29 = arith.cmpi eq, %arg2, %c2_i32 : i32
    %30 = arith.andi %28, %29 : i1
    %31 = arith.extui %30 : i1 to i32
    %c0_i32_17 = arith.constant 0 : i32
    %32 = arith.cmpi ne, %31, %c0_i32_17 : i32
    scf.if %32 {
      %c0_18 = arith.constant 0 : index
      %c0_19 = arith.constant 0 : index
      %33 = vector.load %arg10[%c0_18, %c0_19] : memref<128x128xf32, #tpu.memory_space<vmem>>, vector<128x128xf32>
      %cst_20 = arith.constant 0.000000e+00 : f32
      %34 = vector.broadcast %cst_20 : f32 to vector<128x128xf32>
      %35 = arith.maximumf %33, %34 : vector<128x128xf32>
      %c0_21 = arith.constant 0 : index
      %c0_22 = arith.constant 0 : index
      %36 = vector.load %arg10[%c0_21, %c0_22] : memref<128x128xf32, #tpu.memory_space<vmem>>, vector<128x128xf32>
      tpu.vector_store %arg10[%c0_21, %c0_22], %35 {strides = array<i32>} : memref<128x128xf32, #tpu.memory_space<vmem>>, vector<128x128xf32>,
    } else {
    }
    return
  }
  func.func @transform_0(%arg0: i32, %arg1: i32, %arg2: i32) -> (i32, i32) {
    %c0_i32 = arith.constant 0 : i32
    %c0_i32_0 = arith.constant 0 : i32
    %c0_i32_1 = arith.constant 0 : i32
    return %c0_i32, %c0_i32_0 : i32, i32
  }
  func.func @transform_1(%arg0: i32, %arg1: i32, %arg2: i32) -> (i32, i32, i32) {
    %c0_i32 = arith.constant 0 : i32
    return %arg2, %arg0, %arg1 : i32, i32, i32
  }
  func.func @transform_2(%arg0: i32, %arg1: i32, %arg2: i32) -> (i32, i32) {
    %c0_i32 = arith.constant 0 : i32
    %c0_i32_0 = arith.constant 0 : i32
    return %arg1, %c0_i32 : i32, i32
  }
  func.func @transform_3(%arg0: i32, %arg1: i32, %arg2: i32) -> (i32, i32) {
    %c0_i32 = arith.constant 0 : i32
    %c0_i32_0 = arith.constant 0 : i32
    return %arg0, %c0_i32 : i32, i32
  }
  func.func @transform_4(%arg0: i32, %arg1: i32, %arg2: i32) -> (i32, i32, i32) {
    %c0_i32 = arith.constant 0 : i32
    %c0_i32_0 = arith.constant 0 : i32
    %c0_i32_1 = arith.constant 0 : i32
    %c0_i32_2 = arith.constant 0 : i32
    return %c0_i32, %c0_i32_0, %c0_i32_1 : i32, i32, i32
  }
  func.func @transform_5(%arg0: i32, %arg1: i32, %arg2: i32) -> (i32, i32) {
    %c0_i32 = arith.constant 0 : i32
    %c0_i32_0 = arith.constant 0 : i32
    %c0_i32_1 = arith.constant 0 : i32
    return %c0_i32, %c0_i32_0 : i32, i32
  }
  func.func @transform_6(%arg0: i32, %arg1: i32, %arg2: i32) -> (i32, i32) {
    %c0_i32 = arith.constant 0 : i32
    %c0_i32_0 = arith.constant 0 : i32
    %c0_i32_1 = arith.constant 0 : i32
    return %c0_i32, %c0_i32_0 : i32, i32
  }
  func.func @transform_7(%arg0: i32, %arg1: i32, %arg2: i32) -> (i32, i32) {
    %c0_i32 = arith.constant 0 : i32
    %c0_i32_0 = arith.constant 0 : i32
    return %arg0, %c0_i32 : i32, i32
  }
}

</mosaic_0001>

<bundles_post_ra>
// kernel: rel_graph_conv_layer.1
= control target key start
LH: loop header
LB: loop body
LE: loop exit
PB: predicated region body
PF: predicated region fallthrough
CT: control target
= control target key end

     0   :  { %s2886_s0 = inlined_call_operand.vmem [shape: f32[3,2], index: 0, kind: input, shape index: {}]   ;;  %s2887_s1 = inlined_call_operand.vmem [shape: bf16[3,256,256], index: 1, kind: input, shape index: {}]   ;;  %s2888_s2 = inlined_call_operand.vmem [shape: bf16[256,128], index: 2, kind: input, shape index: {}, may-alias: {2,3}]   ;;  %s2889_s3 = inlined_call_operand.vmem [shape: bf16[256,128], index: 3, kind: input, shape index: {}, may-alias: {2,3}]   ;;  %s2890_s4 = inlined_call_operand.vmem [shape: bf16[2,128,128], index: 4, kind: input, shape index: {}]   ;;  %s2891_s5 = inlined_call_operand.vmem [shape: bf16[128,128], index: 5, kind: input, shape index: {}]   ;;  %s2892_s6 = inlined_call_operand.vmem [shape: f32[1,128], index: 6, kind: input, shape index: {}]   ;;  %s2893_s7 = inlined_call_operand.hbm [shape: f32[256,128], index: 7, kind: output, shape index: {}]  }
   0x1   :  { %2905 = sst [smem:[#allocation18_spill]] %s2886_s0 }
   0x2   :  { %2906 = sst [smem:[#allocation19_spill]] %s2893_s7 }
   0x3   :  { %12 = vsyncpa [#allocation5], 0 }
   0x4   :  { %13 = vsyncpa [#allocation4], 0 }
   0x5   :  { %15 = vsyncpa [#allocation4 + $0x1], 0  ;;  %s2392_s24 = smov 0   ;;  %s2394_s25 = smov 0  }
   0x6   :  { %s2396_s26 = smov 0   ;;  %s2398_s27 = smov 0  }
   0x7   :  { %s2400_s28 = smov 0   ;;  %s2402_s29 = smov 0  }
   0x8   :  { %s2404_s30 = smov 0   ;;  %s2406_s8 = smov 0  }
   0x9   :  { %s2408_s9 = smov 0   ;;  %s2410_s10 = smov 0  }
   0xa   :  { %s2412_s11 = smov 0   ;;  %s2414_s12 = smov 0  }
   0xb LB: > { %2907 = sst [smem:[#allocation10_spill]] %s2302_s24  ;;  %s2895_s13 = sadd.s32 4294967295, %s2346_s12   ;;  %s2346_s12 = sphi %s2414_s12, %s21_s12   ;;  %s2342_s11 = sphi %s2412_s11, %s2946_s11   ;;  %s2338_s10 = sphi %s2410_s10, %s2945_s10   ;;  %s2334_s9 = sphi %s2408_s9, %s2944_s9   ;;  %s2330_s8 = sphi %s2406_s8, %s2943_s8   ;;  %s2326_s30 = sphi %s2404_s30, %s2942_s30   ;;  %s2322_s29 = sphi %s2402_s29, %s2941_s29   ;;  %s2318_s28 = sphi %s2400_s28, %s2940_s28   ;;  %s2314_s27 = sphi %s2398_s27, %s2939_s27   ;;  %s2310_s26 = sphi %s2396_s26, %s2938_s26   ;;  %s2306_s25 = sphi %s2394_s25, %s2937_s25   ;;  %s2302_s24 = sphi %s2392_s24, %s2936_s24  }
   0xc   : > { %s1708_s14 = sadd.s32 4294967294, %s2346_s12   ;;  %s33_s15 = sadd.s32 1, %s2334_s9 }
   0xd   : > { %s36_s16 = sadd.s32 1, %s2338_s10  ;;  %p34_p0 = scmp.ge.s32.totalorder %s33_s15, 3 }
   0xe   : > { %s40_s17 = sadd.s32 1, %s2342_s11  ;;  %p79_p1 = scmp.ne.s32.totalorder %s2318_s28, %s2314_s27 }
   0xf   : > { %s2948_s15 = smov (%p34_p0, %s33_s15), 0  ;;  %s2950_s16 = smov (!%p34_p0, %s36_s16), %s2338_s10 }
  0x10   : > { %2908 = sst [smem:[#allocation11_spill]] %s2948_s15  ;;  %s65_s19 = ssub.s32 %s2334_s9, %s2948_s15 }
  0x11   : > { %p80_p2 = scmp.eq.s32.totalorder %s2346_s12, 0  ;;  %p38_p3 = scmp.ge.s32.totalorder %s2950_s16, 2 }
  0x12   : > { %s213_s20 = sadd.s32 1, %s2310_s26  ;;  %p223_p5 = scmp.ne.s32.totalorder %s2310_s26, %s2306_s25 }
  0x13   : > { %p2467_p4 = por %p80_p2, %p79_p1  ;;  %s2952_s16 = smov (%p38_p3, %s2950_s16), 0 }
  0x14   : > { %2910 = sst [smem:[#allocation12_spill]] %s2952_s16  ;;  %s2954_s17 = smov (!%p38_p3, %s40_s17), %s2342_s11 }
  0x15   : > { %s68_s22 = ssub.s32 %s2338_s10, %s2952_s16  ;;  %p224_p6 = scmp.eq.s32.totalorder %s2895_s13, 11 }
  0x16   : > { %p42_p7 = scmp.ge.s32.totalorder %s2954_s17, 2  ;;  %p229_p8 = scmp.ne.s32.totalorder %s2306_s25, %s2302_s24 }
  0x17   : > { %p2482_p9 = por %p224_p6, %p223_p5  ;;  %p230_p10 = scmp.eq.s32.totalorder %s1708_s14, 11 }
  0x18   : > { %s2956_s17 = smov (%p42_p7, %s2954_s17), 0  ;;  %p1709_p12 = scmp.ge.s32.totalorder %s2346_s12, 1 }
  0x19   : > { %s2911_s23 = scalar_select %p2482_p9, 1, 0 }
  0x1a   : > { %2913 = sst [smem:[#allocation14_spill]] %s2956_s17  ;;  %p2488_p11 = por %p230_p10, %p229_p8 }
  0x1b   : > { %2912 = sst [smem:[#allocation13_spill]] %s2911_s23  ;;  %s66_s16 = ssub.s32 %s2342_s11, %s2956_s17 }
  0x1c   : > { %s2914_s18 = scalar_select %p2488_p11, 1, 0 }
  0x1d   : > { %p237_p13 = scmp.lt.s32.totalorder %s2346_s12, 13  ;;  %s67_s13 = sor.u32 %s66_s16, %s65_s19 }
  0x1e   : > { %2915 = sst [smem:[#allocation15_spill]] %s2914_s18  ;;  %p211_p0 = scmp.eq.s32.totalorder %s66_s16, 0 }
  0x1f   : > { %s69_s15 = sor.u32 %s68_s22, %s67_s13  ;;  %p2496_p1 = pnand %p1709_p12, %p237_p13 }
  0x20   : > { %p70_p2 = scmp.eq.s32.totalorder %s69_s15, 0  ;;  %s2918_s7 = sadd.s32 1, %s2318_s28 }
  0x21   : > { %s2501_s14 = scalar_select %p211_p0, %s2310_s26, %s213_s20  }
  0x22   : > { %s2506_s23 = scalar_select %p70_p2, %s2318_s28, %s2918_s7  }
  0x23   : > { %2917 = sst [smem:[#allocation16_spill]] %s2501_s14  ;;  %p2037_p3 = pneg %p2496_p1 }
  0x24   : > { %2919 = sst [smem:[#allocation17_spill]] %s2506_s23  ;;  %s2920_s18 = sadd.s32 4294967295, %s2346_s12  }
  0x25   : > { %p2512_p5 = scmp.eq.s32.totalorder %s2920_s18, 0  ;;  %s2922_s0 = sld [smem:[#allocation18_spill]] }
  0x27   : > { %p2038_p6 = pnand %p2512_p5, %p2037_p3 }
  0x29   : > { %p2205_p8 = pneg %p2038_p6 }
  0x2b   : > { %s250_s19 = sshll.u32 %s2922_s0, 4  ;;  %s251_s19 = int_to_ptr.vmem [resolvable:$true] %s250_s19 }
  0x2c   : > { %s2203_s15 = scalar_lea.vmem %s251_s19, 64  ;;  %p2211_p13 = scmp.lt.s32.totalorder %s251_s19, %s251_s19 }
  0x2d   : > { %p2204_p7 = scmp.ne.s32.totalorder %s251_s19, %s2203_s15  ;;  %p2212_p0 = scmp.lt.s32.totalorder %s2203_s15, %s2203_s15 }
  0x2f   : > { %p2206_p10 = pnand %p2205_p8, %p2204_p7  ;;  %p2213_p2 = por %p2212_p0, %p2211_p13 }
  0x31   : > { %p2207_p12 = pneg %p2206_p10 }
  0x33   : > { %p2214_p11 = pnand %p2213_p2, %p2207_p12 }
  0x35   : > { %2217 = shalt.err (!%p2214_p11)
}
  0x36   : > { %s2348_s7 = smov [#allocation3]   ;;  %p1711_p9 = scmp.ge.s32.totalorder %s2346_s12, 12 }
  0x37   : > { %2040 = dma.vmem_to_smem (!%p2038_p6), %s251_s19, 64, %s2348_s7, [#allocation5]  }
  0x38   : > { %266 = sbr.rel (%p1711_p9) target bundleno = 78 (0x4e), region = 32 }
  0x3d   : > { %269 = sbr.rel (!%p2467_p4) target bundleno = 78 (0x4e), region = 36  ;;  %s271_s18 = sand.u32 (%p2467_p4), 1, %s2318_s28  }
  0x3e   : > { %s1805_s20 = sshll.u32 (%p2467_p4), %s2342_s11, 5  ;;  %s1712_s22 = sshll.u32 (%p2467_p4), %s271_s18, 6 }
  0x3f   : > { %s276_s16 = sadd.s32 (%p2467_p4), %s2338_s10, %s1805_s20  ;;  %s1715_s13 = sshll.u32 (%p2467_p4), %s2334_s9, 6 }
  0x40   : > { %s278_s15 = sadd.s32 (%p2467_p4), %s1715_s13, %s276_s16  ;;  %s273_s21 = scalar_lea.vmem (%p2467_p4), [#allocation6], %s1712_s22 }
  0x41   : > { %s1716_s0 = sshll.u32 (%p2467_p4), %s278_s15, 2 }
  0x42   : > { %s2531_s19 = scalar_lea.vmem %s2887_s1, %s1716_s0 }
  0x43   : > { %v297_v0 = vld [vmem:[%s2531_s19] sm:$0xf]  ;;  %v299_v1 = vld [vmem:[%s2531_s19 + $0x8] sm:$0xf]  ;;  %v301_v2 = vld [vmem:[%s2531_s19 + $0x10] sm:$0xf] }
  0x44   : > { %298 = vst [vmem:[%s273_s21] sm:$0xf] %v297_v0  ;;  %300 = vst [vmem:[%s273_s21 + $0x4] sm:$0xf] %v299_v1  ;;  %v303_v3 = vld [vmem:[%s2531_s19 + $0x18] sm:$0xf] }
  0x45   : > { %302 = vst [vmem:[%s273_s21 + $0x8] sm:$0xf] %v301_v2  ;;  %v305_v4 = vld [vmem:[%s2531_s19 + $0x20] sm:$0xf]  ;;  %v307_v5 = vld [vmem:[%s2531_s19 + $0x28] sm:$0xf] }
  0x46   : > { %304 = vst [vmem:[%s273_s21 + $0xc] sm:$0xf] %v303_v3  ;;  %306 = vst [vmem:[%s273_s21 + $0x10] sm:$0xf] %v305_v4  ;;  %v309_v6 = vld [vmem:[%s2531_s19 + $0x30] sm:$0xf] }
  0x47   : > { %308 = vst [vmem:[%s273_s21 + $0x14] sm:$0xf] %v307_v5  ;;  %v311_v7 = vld [vmem:[%s2531_s19 + $0x38] sm:$0xf]  ;;  %v313_v8 = vld [vmem:[%s2531_s19 + $0x40] sm:$0xf] }
  0x48   : > { %310 = vst [vmem:[%s273_s21 + $0x18] sm:$0xf] %v309_v6  ;;  %312 = vst [vmem:[%s273_s21 + $0x1c] sm:$0xf] %v311_v7  ;;  %v315_v9 = vld [vmem:[%s2531_s19 + $0x48] sm:$0xf] }
  0x49   : > { %314 = vst [vmem:[%s273_s21 + $0x20] sm:$0xf] %v313_v8  ;;  %v317_v10 = vld [vmem:[%s2531_s19 + $0x50] sm:$0xf]  ;;  %v319_v11 = vld [vmem:[%s2531_s19 + $0x58] sm:$0xf] }
  0x4a   : > { %316 = vst [vmem:[%s273_s21 + $0x24] sm:$0xf] %v315_v9  ;;  %318 = vst [vmem:[%s273_s21 + $0x28] sm:$0xf] %v317_v10  ;;  %v321_v12 = vld [vmem:[%s2531_s19 + $0x60] sm:$0xf] }
  0x4b   : > { %320 = vst [vmem:[%s273_s21 + $0x2c] sm:$0xf] %v319_v11  ;;  %v323_v13 = vld [vmem:[%s2531_s19 + $0x68] sm:$0xf]  ;;  %v325_v14 = vld [vmem:[%s2531_s19 + $0x70] sm:$0xf] }
  0x4c   : > { %322 = vst [vmem:[%s273_s21 + $0x30] sm:$0xf] %v321_v12  ;;  %324 = vst [vmem:[%s273_s21 + $0x34] sm:$0xf] %v323_v13  ;;  %v327_v15 = vld [vmem:[%s2531_s19 + $0x78] sm:$0xf] }
  0x4d   : > { %326 = vst [vmem:[%s273_s21 + $0x38] sm:$0xf] %v325_v14  ;;  %328 = vst [vmem:[%s273_s21 + $0x3c] sm:$0xf] %v327_v15 }
  0x4e PF: > { %405 = sbr.rel (%p2496_p1) target bundleno = 906 (0x38a), region = 85 }
  0x53   : > { %2293 = dma.done.wait (%p2512_p5), [#allocation5], 64  }
  0x54   : > { %2295 = vsyncadd (%p2512_p5), [#allocation5], 4294967232  ;;  %s412_s0 = sand.u32 1, %s2314_s27  }
  0x55   : > { %s1719_s23 = sshll.u32 %s412_s0, 6 }
  0x56   : > { %s2556_s14 = scalar_lea.vmem [#allocation6], %s1719_s23 }
  0x57   : > { %418 = sfence }
  0x58   : > { %s2904_s7 = sand.u32 1, %s2306_s25   ;;  %s1721_s24 = sshll.u32 %s2326_s30, 4 }
  0x59   : > { %s1720_s18 = sshll.u32 %s2904_s7, 7  ;;  %p456_p4 = scmp.lt.s32.totalorder %s1721_s24, 31 }
  0x5a   : > { %s1723_s20 = sshll.u32 %s2330_s8, 4  ;;  %p469_p11 = scmp.eq.s32.totalorder %s2322_s29, 0 }
  0x5b   : > { %s2958_s24 = smov (!%p456_p4, %s1721_s24), 31  ;;  %p462_p9 = scmp.lt.s32.totalorder %s1723_s20, 31 }
  0x5c   : > { %s1722_s17 = sshll.u32 %s2958_s24, 2  ;;  %s2574_s0 = scalar_lea.vmem [#allocation7], %s1720_s18 }
  0x5d   : > { %s2567_s16 = scalar_lea.vmem %s2888_s2, %s1722_s17  ;;  %s2960_s20 = smov (!%p462_p9, %s1723_s20), 31 }
  0x5e   : > { %s1724_s13 = sshll.u32 %s2960_s20, 2  ;;  %p1725_p1 = scmp.ne.s32.totalorder %s2322_s29, 0 }
  0x5f   : > { %s2572_s21 = scalar_lea.vmem %s2889_s3, %s1724_s13 }
  0x60   : > { %472 = sbr.rel (%p1725_p1) target bundleno = 359 (0x167), region = 97 }
  0x65   : > { %v2147_v16 = vld [vmem:[%s2890_s4 + $0x38] sm:$0xff]   ;;  %v2149_v18 = vld [vmem:[%s2890_s4 + $0x30] sm:$0xff]   ;;  %v2151_v20 = vld [vmem:[%s2890_s4 + $0x28] sm:$0xff]  }
  0x66   : > { %v2148_v17 = vld [vmem:[%s2890_s4 + $0x78] sm:$0xff]   ;;  %1871 = vmatprep.subr.bf16.mxu0 %v2147_v16  ;;  %v2150_v19 = vld [vmem:[%s2890_s4 + $0x70] sm:$0xff]   ;;  %v2152_v21 = vld [vmem:[%s2890_s4 + $0x68] sm:$0xff]  }
  0x67   : > { %1903 = vmatprep.subr.bf16.mxu1 %v2148_v17  ;;  %1872 = vmatpush3.bf16.msra.mxu0 %v2147_v16  ;;  %v2153_v22 = vld [vmem:[%s2890_s4 + $0x20] sm:$0xff]   ;;  %v2155_v24 = vld [vmem:[%s2890_s4 + $0x18] sm:$0xff]   ;;  %v2157_v26 = vld [vmem:[%s2890_s4 + $0x10] sm:$0xff]  }
  0x68   : > { %1904 = vmatpush3.bf16.msra.mxu1 %v2148_v17  ;;  %1873 = vmatprep.subr.bf16.mxu0 %v2149_v18  ;;  %v2154_v23 = vld [vmem:[%s2890_s4 + $0x60] sm:$0xff]   ;;  %v2156_v25 = vld [vmem:[%s2890_s4 + $0x58] sm:$0xff]   ;;  %v2158_v27 = vld [vmem:[%s2890_s4 + $0x50] sm:$0xff]  }
  0x69   : > { %1905 = vmatprep.subr.bf16.mxu1 %v2150_v19  ;;  %v2163_v28 = vld [vmem:[%s2567_s16] sm:$0xff]   ;;  %v2159_v30 = vld [vmem:[%s2890_s4 + $0x8] sm:$0xff]   ;;  %v2167_v36 = vld [vmem:[%s2567_s16 + $0x10] sm:$0xff]  }
  0x6a   : > { %v2164_v29 = vld [vmem:[%s2567_s16] sm:$0xff]   ;;  %1887 = vmatprep.mubr.bf16.mxu0 %v2163_v28  ;;  %v2160_v31 = vld [vmem:[%s2890_s4 + $0x48] sm:$0xff]   ;;  %v2168_v37 = vld [vmem:[%s2567_s16 + $0x10] sm:$0xff]  }
  0x6b   : > { %1874 = vmatpush3.bf16.msra.mxu0 %v2149_v18  ;;  %1919 = vmatprep.mubr.bf16.mxu1 %v2164_v29  ;;  %v2161_v32 = vld [vmem:[%s2890_s4] sm:$0xff]   ;;  %v2165_v34 = vld [vmem:[%s2567_s16 + $0x8] sm:$0xff]   ;;  %v2169_v38 = vld [vmem:[%s2567_s16 + $0x18] sm:$0xff]  }
  0x6c   : > { %1906 = vmatpush3.bf16.msra.mxu1 %v2150_v19  ;;  %1875 = vmatprep.subr.bf16.mxu0 %v2151_v20  ;;  %v2162_v33 = vld [vmem:[%s2890_s4 + $0x40] sm:$0xff]   ;;  %v2166_v35 = vld [vmem:[%s2567_s16 + $0x8] sm:$0xff]   ;;  %v2170_v39 = vld [vmem:[%s2567_s16 + $0x18] sm:$0xff]  }
  0x6d   : > { %1907 = vmatprep.subr.bf16.mxu1 %v2152_v21  ;;  %v2171_v40 = vld [vmem:[%s2567_s16 + $0x20] sm:$0xff]   ;;  %v2173_v42 = vld [vmem:[%s2567_s16 + $0x28] sm:$0xff]   ;;  %v2175_v44 = vld [vmem:[%s2567_s16 + $0x30] sm:$0xff]  }
  0x6e   : > { %v2172_v41 = vld [vmem:[%s2567_s16 + $0x20] sm:$0xff]   ;;  %v2174_v43 = vld [vmem:[%s2567_s16 + $0x28] sm:$0xff]   ;;  %v2176_v45 = vld [vmem:[%s2567_s16 + $0x30] sm:$0xff]  }
  0x6f   : > { %1876 = vmatpush3.bf16.msra.mxu0 %v2151_v20  ;;  %v2177_v46 = vld [vmem:[%s2567_s16 + $0x38] sm:$0xff]  }
  0x70   : > { %1908 = vmatpush3.bf16.msra.mxu1 %v2152_v21  ;;  %1877 = vmatprep.subr.bf16.mxu0 %v2153_v22  ;;  %v2178_v47 = vld [vmem:[%s2567_s16 + $0x38] sm:$0xff]  }
  0x71   : > { %1909 = vmatprep.subr.bf16.mxu1 %v2154_v23 }
  0x73   : > { %1878 = vmatpush3.bf16.msra.mxu0 %v2153_v22 }
  0x74   : > { %1910 = vmatpush3.bf16.msra.mxu1 %v2154_v23  ;;  %1879 = vmatprep.subr.bf16.mxu0 %v2155_v24 }
  0x75   : > { %1911 = vmatprep.subr.bf16.mxu1 %v2156_v25 }
  0x77   : > { %1880 = vmatpush3.bf16.msra.mxu0 %v2155_v24 }
  0x78   : > { %1912 = vmatpush3.bf16.msra.mxu1 %v2156_v25  ;;  %1881 = vmatprep.subr.bf16.mxu0 %v2157_v26 }
  0x79   : > { %1913 = vmatprep.subr.bf16.mxu1 %v2158_v27 }
  0x7b   : > { %1882 = vmatpush3.bf16.msra.mxu0 %v2157_v26 }
  0x7c   : > { %1914 = vmatpush3.bf16.msra.mxu1 %v2158_v27  ;;  %1883 = vmatprep.subr.bf16.mxu0 %v2159_v30 }
  0x7d   : > { %1915 = vmatprep.subr.bf16.mxu1 %v2160_v31 }
  0x7f   : > { %1884 = vmatpush3.bf16.msra.mxu0 %v2159_v30 }
  0x80   : > { %1916 = vmatpush3.bf16.msra.mxu1 %v2160_v31  ;;  %1885 = vmatprep.subr.bf16.mxu0 %v2161_v32 }
  0x81   : > { %1917 = vmatprep.subr.bf16.mxu1 %v2162_v33 }
  0x83   : > { %1886 = vmatpush3.bf16.msra.mxu0 %v2161_v32 }
  0x84   : > { %1918 = vmatpush3.bf16.msra.mxu1 %v2162_v33 }
  0x86   : > { %1888 = vmatmul.mubr.bf16.vlgmr.msra.gmra.mxu0 %v2165_v34 }
  0x87   : > { %1920 = vmatmul.mubr.bf16.vlgmr.msra.gmra.mxu1 %v2166_v35  ;;  %1891 = vmatprep.mubr.bf16.mxu0 %v2167_v36 }
  0x88   : > { %1923 = vmatprep.mubr.bf16.mxu1 %v2168_v37 }
  0x8e   : > { %1892 = vmatmul.mubr.bf16.gmra.mxu0 %v2169_v38 }
  0x8f   : > { %1924 = vmatmul.mubr.bf16.gmra.mxu1 %v2170_v39  ;;  %1895 = vmatprep.mubr.bf16.mxu0 %v2171_v40 }
  0x90   : > { %1927 = vmatprep.mubr.bf16.mxu1 %v2172_v41 }
  0x96   : > { %1896 = vmatmul.mubr.bf16.gmra.mxu0 %v2173_v42 }
  0x97   : > { %1928 = vmatmul.mubr.bf16.gmra.mxu1 %v2174_v43  ;;  %1899 = vmatprep.mubr.bf16.mxu0 %v2175_v44 }
  0x98   : > { %1931 = vmatprep.mubr.bf16.mxu1 %v2176_v45 }
  0x9e   : > { %1900 = vmatmul.mubr.bf16.gmra.mxu0 %v2177_v46 }
  0x9f   : > { %1932 = vmatmul.mubr.bf16.gmra.mxu1 %v2178_v47 }
 0x146   : > { %v1889_v48 = vpop.f32.mrf.mxu0 }
 0x147   : > { %700 = vst [vmem:[#allocation2 + $0xd8] sm:$0xff] %v1889_v48  ;;  %v1921_v49 = vpop.f32.mrf.mxu1 }
 0x148   : > { %943 = vst [vmem:[#allocation2 + $0x40] sm:$0xff] %v1921_v49  ;;  %v635_v50 = vpop.f32.mrf.mxu0 }
 0x149   : > { %698 = vst [vmem:[#allocation2 + $0xb0] sm:$0xff] %v635_v50  ;;  %v877_v51 = vpop.f32.mrf.mxu1 }
 0x14a   : > { %941 = vst [vmem:[#allocation2 + $0x38] sm:$0xff] %v877_v51  ;;  %v1890_v52 = vpop.f32.mrf.mxu0 }
 0x14b   : > { %701 = vst [vmem:[#allocation2 + $0x18] sm:$0xff] %v1890_v52  ;;  %v1922_v53 = vpop.f32.mrf.mxu1 }
 0x14c   : > { %944 = vst [vmem:[#allocation2 + $0xc8] sm:$0xff] %v1922_v53  ;;  %v638_v54 = vpop.f32.mrf.mxu0 }
 0x14d   : > { %699 = vst [vmem:[#allocation2] sm:$0xff] %v638_v54  ;;  %v880_v55 = vpop.f32.mrf.mxu1 }
 0x14e   : > { %942 = vst [vmem:[#allocation2 + $0x58] sm:$0xff] %v880_v55  ;;  %v1893_v56 = vpop.f32.mrf.mxu0 }
 0x14f   : > { %704 = vst [vmem:[#allocation2 + $0x30] sm:$0xff] %v1893_v56  ;;  %v1925_v57 = vpop.f32.mrf.mxu1 }
 0x150   : > { %947 = vst [vmem:[#allocation2 + $0x70] sm:$0xff] %v1925_v57  ;;  %v651_v58 = vpop.f32.mrf.mxu0 }
 0x151   : > { %702 = vst [vmem:[#allocation2 + $0x50] sm:$0xff] %v651_v58  ;;  %v893_v59 = vpop.f32.mrf.mxu1 }
 0x152   : > { %945 = vst [vmem:[#allocation2 + $0xe0] sm:$0xff] %v893_v59  ;;  %v1894_v60 = vpop.f32.mrf.mxu0 }
 0x153   : > { %705 = vst [vmem:[#allocation2 + $0x48] sm:$0xff] %v1894_v60  ;;  %v1926_v61 = vpop.f32.mrf.mxu1 }
 0x154   : > { %948 = vst [vmem:[#allocation2 + $0xc0] sm:$0xff] %v1926_v61  ;;  %v654_v62 = vpop.f32.mrf.mxu0 }
 0x155   : > { %703 = vst [vmem:[#allocation2 + $0x68] sm:$0xff] %v654_v62  ;;  %v896_v63 = vpop.f32.mrf.mxu1 }
 0x156   : > { %946 = vst [vmem:[#allocation2 + $0x90] sm:$0xff] %v896_v63  ;;  %v1897_v0 = vpop.f32.mrf.mxu0 }
 0x157   : > { %708 = vst [vmem:[#allocation2 + $0xe8] sm:$0xff] %v1897_v0  ;;  %v1929_v1 = vpop.f32.mrf.mxu1 }
 0x158   : > { %951 = vst [vmem:[#allocation2 + $0x10] sm:$0xff] %v1929_v1  ;;  %v667_v2 = vpop.f32.mrf.mxu0 }
 0x159   : > { %706 = vst [vmem:[#allocation2 + $0x80] sm:$0xff] %v667_v2  ;;  %v909_v3 = vpop.f32.mrf.mxu1 }
 0x15a   : > { %949 = vst [vmem:[#allocation2 + $0xa8] sm:$0xff] %v909_v3  ;;  %v1898_v4 = vpop.f32.mrf.mxu0 }
 0x15b   : > { %709 = vst [vmem:[#allocation2 + $0xb8] sm:$0xff] %v1898_v4  ;;  %v1930_v5 = vpop.f32.mrf.mxu1 }
 0x15c   : > { %952 = vst [vmem:[#allocation2 + $0x28] sm:$0xff] %v1930_v5  ;;  %v670_v6 = vpop.f32.mrf.mxu0 }
 0x15d   : > { %707 = vst [vmem:[#allocation2 + $0x88] sm:$0xff] %v670_v6  ;;  %v912_v7 = vpop.f32.mrf.mxu1 }
 0x15e   : > { %950 = vst [vmem:[#allocation2 + $0xd0] sm:$0xff] %v912_v7  ;;  %v1901_v8 = vpop.f32.mrf.mxu0 }
 0x15f   : > { %712 = vst [vmem:[#allocation2 + $0x8] sm:$0xff] %v1901_v8  ;;  %v1933_v9 = vpop.f32.mrf.mxu1 }
 0x160   : > { %955 = vst [vmem:[#allocation2 + $0x20] sm:$0xff] %v1933_v9  ;;  %v683_v10 = vpop.f32.mrf.mxu0 }
 0x161   : > { %710 = vst [vmem:[#allocation2 + $0x60] sm:$0xff] %v683_v10  ;;  %v925_v11 = vpop.f32.mrf.mxu1 }
 0x162   : > { %953 = vst [vmem:[#allocation2 + $0xa0] sm:$0xff] %v925_v11  ;;  %v1902_v12 = vpop.f32.mrf.mxu0 }
 0x163   : > { %713 = vst [vmem:[#allocation2 + $0x78] sm:$0xff] %v1902_v12  ;;  %v1934_v13 = vpop.f32.mrf.mxu1 }
 0x164   : > { %956 = vst [vmem:[#allocation2 + $0x98] sm:$0xff] %v1934_v13  ;;  %v686_v14 = vpop.f32.mrf.mxu0 }
 0x165   : > { %711 = vst [vmem:[#allocation2 + $0xf0] sm:$0xff] %v686_v14  ;;  %v928_v15 = vpop.f32.mrf.mxu1 }
 0x166   : > { %954 = vst [vmem:[#allocation2 + $0xf8] sm:$0xff] %v928_v15 }
 0x167 PF: > { %p957_p3 = scmp.eq.s32.totalorder %s2326_s30, 0 }
 0x169   : > { %p958_p5 = pnand %p957_p3, %p469_p11 }
 0x16b   : > { %961 = sbr.rel (%p958_p5) target bundleno = 611 (0x263), region = 101 }
 0x170   : > { %v2179_v16 = vld [vmem:[%s2891_s5 + $0x38] sm:$0xff]   ;;  %v2180_v17 = vld [vmem:[%s2891_s5 + $0x30] sm:$0xff]   ;;  %v2181_v18 = vld [vmem:[%s2891_s5 + $0x28] sm:$0xff]  }
 0x171   : > { %1935 = vmatprep.subr.bf16.mxu0 %v2179_v16  ;;  %1999 = vmatprep.subr.bf16.mxu1 %v2179_v16  ;;  %v2182_v19 = vld [vmem:[%s2891_s5 + $0x20] sm:$0xff]   ;;  %v2183_v22 = vld [vmem:[%s2891_s5 + $0x18] sm:$0xff]   ;;  %v2184_v23 = vld [vmem:[%s2891_s5 + $0x10] sm:$0xff]  }
 0x172   : > { %1936 = vmatpush3.bf16.msra.mxu0 %v2179_v16  ;;  %2007 = vmatpush3.bf16.msra.mxu1 %v2179_v16  ;;  %v2187_v20 = vld [vmem:[%s2572_s21] sm:$0xff]   ;;  %v2185_v24 = vld [vmem:[%s2891_s5 + $0x8] sm:$0xff]   ;;  %v2191_v28 = vld [vmem:[%s2572_s21 + $0x10] sm:$0xff]  }
 0x173   : > { %1937 = vmatprep.subr.bf16.mxu0 %v2180_v17  ;;  %2000 = vmatprep.subr.bf16.mxu1 %v2180_v17  ;;  %v2188_v21 = vld [vmem:[%s2572_s21 + $0x20] sm:$0xff]   ;;  %v2189_v26 = vld [vmem:[%s2572_s21 + $0x8] sm:$0xff]   ;;  %v2192_v29 = vld [vmem:[%s2572_s21 + $0x30] sm:$0xff]  }
 0x174   : > { %1951 = vmatprep.mubr.bf16.mxu0 %v2187_v20  ;;  %1959 = vmatprep.mubr.bf16.mxu1 %v2188_v21  ;;  %v2186_v25 = vld [vmem:[%s2891_s5] sm:$0xff]   ;;  %v2190_v27 = vld [vmem:[%s2572_s21 + $0x28] sm:$0xff]   ;;  %v2193_v30 = vld [vmem:[%s2572_s21 + $0x18] sm:$0xff]  }
 0x175   : > { %v2194_v31 = vld [vmem:[%s2572_s21 + $0x38] sm:$0xff]   ;;  %v1774_v32 = vld [vmem:[%s2892_s6] ss:$0 sm:$0xff] }
 0x176   : > { %1938 = vmatpush3.bf16.msra.mxu0 %v2180_v17  ;;  %2008 = vmatpush3.bf16.msra.mxu1 %v2180_v17 }
 0x177   : > { %1939 = vmatprep.subr.bf16.mxu0 %v2181_v18  ;;  %2001 = vmatprep.subr.bf16.mxu1 %v2181_v18 }
 0x17a   : > { %1940 = vmatpush3.bf16.msra.mxu0 %v2181_v18  ;;  %2009 = vmatpush3.bf16.msra.mxu1 %v2181_v18 }
 0x17b   : > { %1941 = vmatprep.subr.bf16.mxu0 %v2182_v19  ;;  %2002 = vmatprep.subr.bf16.mxu1 %v2182_v19 }
 0x17e   : > { %1942 = vmatpush3.bf16.msra.mxu0 %v2182_v19  ;;  %2010 = vmatpush3.bf16.msra.mxu1 %v2182_v19 }
 0x17f   : > { %1943 = vmatprep.subr.bf16.mxu0 %v2183_v22  ;;  %2003 = vmatprep.subr.bf16.mxu1 %v2183_v22 }
 0x182   : > { %1944 = vmatpush3.bf16.msra.mxu0 %v2183_v22  ;;  %2011 = vmatpush3.bf16.msra.mxu1 %v2183_v22 }
 0x183   : > { %1945 = vmatprep.subr.bf16.mxu0 %v2184_v23  ;;  %2004 = vmatprep.subr.bf16.mxu1 %v2184_v23 }
 0x186   : > { %1946 = vmatpush3.bf16.msra.mxu0 %v2184_v23  ;;  %2012 = vmatpush3.bf16.msra.mxu1 %v2184_v23 }
 0x187   : > { %1947 = vmatprep.subr.bf16.mxu0 %v2185_v24  ;;  %2005 = vmatprep.subr.bf16.mxu1 %v2185_v24 }
 0x18a   : > { %1948 = vmatpush3.bf16.msra.mxu0 %v2185_v24  ;;  %2013 = vmatpush3.bf16.msra.mxu1 %v2185_v24 }
 0x18b   : > { %1949 = vmatprep.subr.bf16.mxu0 %v2186_v25  ;;  %2006 = vmatprep.subr.bf16.mxu1 %v2186_v25 }
 0x18e   : > { %1950 = vmatpush3.bf16.msra.mxu0 %v2186_v25  ;;  %2014 = vmatpush3.bf16.msra.mxu1 %v2186_v25 }
 0x191   : > { %1952 = vmatmul.mubr.bf16.vlgmr.msra.gmra.mxu0 %v2189_v26  ;;  %1960 = vmatmul.mubr.bf16.vlgmr.msra.gmra.mxu1 %v2190_v27 }
 0x192   : > { %1955 = vmatprep.mubr.bf16.mxu0 %v2191_v28  ;;  %1963 = vmatprep.mubr.bf16.mxu1 %v2192_v29 }
 0x199   : > { %1956 = vmatmul.mubr.bf16.gmra.mxu0 %v2193_v30  ;;  %1964 = vmatmul.mubr.bf16.gmra.mxu1 %v2194_v31 }
 0x251   : > { %v1953_v33 = vpop.f32.mrf.mxu0  ;;  %v1961_v34 = vpop.f32.mrf.mxu1 }
 0x252   : > { %v1140_v35 = vadd.f32 %v1953_v33, %v1774_v32  ;;  %v1172_v36 = vadd.f32 %v1961_v34, %v1774_v32 }
 0x253   : > { %v1131_v37 = vpop.f32.mrf.mxu0  ;;  %v1163_v38 = vpop.f32.mrf.mxu1 }
 0x254   : > { %1196 = vst [vmem:[%s2574_s0 + $0x10] sm:$0xff] %v1140_v35  ;;  %1204 = vst [vmem:[%s2574_s0 + $0x50] sm:$0xff] %v1172_v36  ;;  %v1132_v39 = vadd.f32 %v1774_v32, %v1131_v37  ;;  %v1164_v40 = vadd.f32 %v1774_v32, %v1163_v38 }
 0x255   : > { %v1954_v41 = vpop.f32.mrf.mxu0  ;;  %v1962_v42 = vpop.f32.mrf.mxu1 }
 0x256   : > { %1194 = vst [vmem:[%s2574_s0] sm:$0xff] %v1132_v39  ;;  %1202 = vst [vmem:[%s2574_s0 + $0x40] sm:$0xff] %v1164_v40  ;;  %v1143_v43 = vadd.f32 %v1954_v41, %v1774_v32  ;;  %v1175_v44 = vadd.f32 %v1962_v42, %v1774_v32 }
 0x257   : > { %v1134_v45 = vpop.f32.mrf.mxu0  ;;  %v1166_v46 = vpop.f32.mrf.mxu1 }
 0x258   : > { %1197 = vst [vmem:[%s2574_s0 + $0x18] sm:$0xff] %v1143_v43  ;;  %1205 = vst [vmem:[%s2574_s0 + $0x58] sm:$0xff] %v1175_v44  ;;  %v1135_v47 = vadd.f32 %v1774_v32, %v1134_v45  ;;  %v1167_v48 = vadd.f32 %v1774_v32, %v1166_v46 }
 0x259   : > { %v1957_v49 = vpop.f32.mrf.mxu0  ;;  %v1965_v50 = vpop.f32.mrf.mxu1 }
 0x25a   : > { %1195 = vst [vmem:[%s2574_s0 + $0x8] sm:$0xff] %v1135_v47  ;;  %1203 = vst [vmem:[%s2574_s0 + $0x48] sm:$0xff] %v1167_v48  ;;  %v1156_v51 = vadd.f32 %v1957_v49, %v1774_v32  ;;  %v1188_v52 = vadd.f32 %v1965_v50, %v1774_v32 }
 0x25b   : > { %v1147_v53 = vpop.f32.mrf.mxu0  ;;  %v1179_v54 = vpop.f32.mrf.mxu1 }
 0x25c   : > { %1200 = vst [vmem:[%s2574_s0 + $0x30] sm:$0xff] %v1156_v51  ;;  %1208 = vst [vmem:[%s2574_s0 + $0x70] sm:$0xff] %v1188_v52  ;;  %v1148_v55 = vadd.f32 %v1774_v32, %v1147_v53  ;;  %v1180_v56 = vadd.f32 %v1774_v32, %v1179_v54 }
 0x25d   : > { %v1958_v57 = vpop.f32.mrf.mxu0  ;;  %v1966_v58 = vpop.f32.mrf.mxu1 }
 0x25e   : > { %1198 = vst [vmem:[%s2574_s0 + $0x20] sm:$0xff] %v1148_v55  ;;  %1206 = vst [vmem:[%s2574_s0 + $0x60] sm:$0xff] %v1180_v56  ;;  %v1159_v59 = vadd.f32 %v1958_v57, %v1774_v32  ;;  %v1191_v60 = vadd.f32 %v1966_v58, %v1774_v32 }
 0x25f   : > { %v1150_v61 = vpop.f32.mrf.mxu0  ;;  %v1182_v62 = vpop.f32.mrf.mxu1 }
 0x260   : > { %1201 = vst [vmem:[%s2574_s0 + $0x38] sm:$0xff] %v1159_v59  ;;  %1209 = vst [vmem:[%s2574_s0 + $0x78] sm:$0xff] %v1191_v60  ;;  %v1151_v63 = vadd.f32 %v1774_v32, %v1150_v61  ;;  %v1183_v0 = vadd.f32 %v1774_v32, %v1182_v62 }
 0x262   : > { %1199 = vst [vmem:[%s2574_s0 + $0x28] sm:$0xff] %v1151_v63  ;;  %1207 = vst [vmem:[%s2574_s0 + $0x68] sm:$0xff] %v1183_v0 }
 0x263 PF: > { %s1791_s21 = sshll.u32 %s2322_s29, 7  ;;  %v1226_v1 = vld [vmem:[#allocation2 + $0x8] sm:$0xff]  ;;  %v1227_v2 = vld [vmem:[#allocation2 + $0x78] sm:$0xff]  ;;  %v1262_v3 = vld [vmem:[#allocation2 + $0x20] sm:$0xff]  ;;  %p1514_p6 = scmp.eq.s32.totalorder %s2326_s30, 1 }
 0x264   : > { %s1211_s20 = sld [smem:[#allocation3 + %s1791_s21]]  ;;  %s1245_s17 = sadd.s32 1, %s1791_s21  ;;  %v1263_v4 = vld [vmem:[#allocation2 + $0x98] sm:$0xff]  ;;  %v1224_v5 = vld [vmem:[#allocation2 + $0x60] sm:$0xff]  ;;  %v1225_v6 = vld [vmem:[#allocation2 + $0xf0] sm:$0xff] }
 0x265   : > { %s1246_s18 = sld [smem:[#allocation3 + %s1245_s17]]  ;;  %v1260_v7 = vld [vmem:[#allocation2 + $0xa0] sm:$0xff]  ;;  %v1261_v8 = vld [vmem:[#allocation2 + $0xf8] sm:$0xff]  ;;  %v1222_v10 = vld [vmem:[#allocation2 + $0xe8] sm:$0xff]  ;;  %p1515_p7 = scmp.eq.s32.totalorder %s2322_s29, 2 }
 0x266   : > { %v1223_v11 = vld [vmem:[#allocation2 + $0xb8] sm:$0xff]  ;;  %v1258_v12 = vld [vmem:[#allocation2 + $0x10] sm:$0xff]  ;;  %v1259_v17 = vld [vmem:[#allocation2 + $0x28] sm:$0xff] }
 0x267   : > { %v1220_v18 = vld [vmem:[#allocation2 + $0x80] sm:$0xff]  ;;  %v1221_v23 = vld [vmem:[#allocation2 + $0x88] sm:$0xff]  ;;  %v1257_v25 = vld [vmem:[#allocation2 + $0xd0] sm:$0xff]  ;;  %p2742_p8 = pnand %p1515_p7, %p1514_p6 }
 0x268   : > { %v1256_v24 = vld [vmem:[#allocation2 + $0xa8] sm:$0xff]  ;;  %v1218_v30 = vld [vmem:[#allocation2 + $0x30] sm:$0xff]  ;;  %v2195_v36 = vld [vmem:[%s2556_s14] sm:$0xff]  }
 0x269   : > { %v1254_v31 = vld [vmem:[#allocation2 + $0x70] sm:$0xff]  ;;  %v2196_v41 = vld [vmem:[%s2556_s14 + $0x20] sm:$0xff]   ;;  %v1219_v46 = vld [vmem:[#allocation2 + $0x48] sm:$0xff]  ;;  %1983 = vmatprep.mubr.bf16.mxu0 %v2195_v36 }
 0x26a   : > { %v2696_v9 = vstv %s1211_s20  ;;  %v1255_v48 = vld [vmem:[#allocation2 + $0xc0] sm:$0xff]  ;;  %1991 = vmatprep.mubr.bf16.mxu1 %v2196_v41  ;;  %v1216_v53 = vld [vmem:[#allocation2 + $0x50] sm:$0xff]  ;;  %v1217_v57 = vld [vmem:[#allocation2 + $0x68] sm:$0xff] }
 0x26b   : > { %v1243_v13 = vmul.f32 %v2696_v9, %v1226_v1  ;;  %v1244_v14 = vmul.f32 %v2696_v9, %v1227_v2  ;;  %v2700_v15 = vstv %s1246_s18  ;;  %v1241_v16 = vmul.f32 %v2696_v9, %v1224_v5  ;;  %v1252_v58 = vld [vmem:[#allocation2 + $0xe0] sm:$0xff]  ;;  %v1253_v59 = vld [vmem:[#allocation2 + $0x90] sm:$0xff]  ;;  %v1214_v0 = vld [vmem:[#allocation2 + $0xd8] sm:$0xff] }
 0x26c   : > { %v1279_v19 = vmul.f32 %v2700_v15, %v1262_v3  ;;  %v1280_v20 = vmul.f32 %v2700_v15, %v1263_v4  ;;  %v1242_v21 = vmul.f32 %v2696_v9, %v1225_v6  ;;  %v1277_v22 = vmul.f32 %v2700_v15, %v1260_v7  ;;  %v1215_v4 = vld [vmem:[#allocation2 + $0x18] sm:$0xff]  ;;  %v1250_v5 = vld [vmem:[#allocation2 + $0x40] sm:$0xff]  ;;  %v1251_v6 = vld [vmem:[#allocation2 + $0xc8] sm:$0xff] }
 0x26d   : > { %v1278_v26 = vmul.f32 %v2700_v15, %v1261_v8  ;;  %v1239_v27 = vmul.f32 %v2696_v9, %v1222_v10  ;;  %v1240_v28 = vmul.f32 %v2696_v9, %v1223_v11  ;;  %v1275_v29 = vmul.f32 %v2700_v15, %v1258_v12  ;;  %v1212_v12 = vld [vmem:[#allocation2 + $0xb0] sm:$0xff] }
 0x26e   : > { %v1295_v32 = vadd.f32 %v1279_v19, %v1243_v13  ;;  %v1296_v33 = vadd.f32 %v1280_v20, %v1244_v14  ;;  %v1293_v34 = vadd.f32 %v1277_v22, %v1241_v16  ;;  %v1276_v35 = vmul.f32 %v2700_v15, %v1259_v17  ;;  %v1213_v17 = vld [vmem:[#allocation2] sm:$0xff]  ;;  %v1249_v19 = vld [vmem:[#allocation2 + $0x58] sm:$0xff]  ;;  %v1307_v36 = vld [vmem:[%s2574_s0 + $0x50] sm:$0xff] }
 0x26f   : > { %v1294_v37 = vadd.f32 %v1278_v26, %v1242_v21  ;;  %v1291_v38 = vadd.f32 %v1275_v29, %v1239_v27  ;;  %v1237_v39 = vmul.f32 %v2696_v9, %v1220_v18  ;;  %v1238_v40 = vmul.f32 %v2696_v9, %v1221_v23  ;;  %v1248_v18 = vld [vmem:[#allocation2 + $0x38] sm:$0xff] }
 0x270   : > { %v1336_v42 = vpack.c.bf16 %v1296_v33, %v1295_v32  ;;  %v1292_v43 = vadd.f32 %v1276_v35, %v1240_v28  ;;  %v1273_v44 = vmul.f32 %v2700_v15, %v1256_v24  ;;  %v1274_v45 = vmul.f32 %v2700_v15, %v1257_v25  ;;  %v2200_v32 = vld [vmem:[%s2556_s14 + $0x30] sm:$0xff]   ;;  %v2201_v33 = vld [vmem:[%s2556_s14 + $0x18] sm:$0xff]  }
 0x271   : > { %v1335_v47 = vpack.c.bf16 %v1294_v37, %v1293_v34  ;;  %v1235_v49 = vmul.f32 %v2696_v9, %v1218_v30  ;;  %v1271_v50 = vmul.f32 %v2700_v15, %v1254_v31  ;;  %v1236_v55 = vmul.f32 %v2696_v9, %v1219_v46  ;;  %v2198_v30 = vld [vmem:[%s2556_s14 + $0x28] sm:$0xff]   ;;  %v2199_v31 = vld [vmem:[%s2556_s14 + $0x10] sm:$0xff]   ;;  %v2202_v34 = vld [vmem:[%s2556_s14 + $0x38] sm:$0xff]  }
 0x272   : > { %1967 = vmatprep.subr.bf16.mxu0 %v1336_v42  ;;  %2015 = vmatprep.subr.bf16.mxu1 %v1336_v42  ;;  %v1289_v51 = vadd.f32 %v1273_v44, %v1237_v39  ;;  %v1290_v52 = vadd.f32 %v1274_v45, %v1238_v40  ;;  %v1334_v54 = vpack.c.bf16 %v1292_v43, %v1291_v38  ;;  %v1299_v35 = vld [vmem:[%s2574_s0 + $0x10] sm:$0xff]  ;;  %v1297_v39 = vld [vmem:[%s2574_s0] sm:$0xff]  ;;  %v1300_v45 = vld [vmem:[%s2574_s0 + $0x18] sm:$0xff] }
 0x273   : > { %1968 = vmatpush3.bf16.msra.mxu0 %v1336_v42  ;;  %2023 = vmatpush3.bf16.msra.mxu1 %v1336_v42  ;;  %v1272_v56 = vmul.f32 %v2700_v15, %v1255_v48  ;;  %v1287_v60 = vadd.f32 %v1271_v50, %v1235_v49  ;;  %v1233_v62 = vmul.f32 %v2696_v9, %v1216_v53  ;;  %v1305_v40 = vld [vmem:[%s2574_s0 + $0x40] sm:$0xff]  ;;  %v1308_v46 = vld [vmem:[%s2574_s0 + $0x58] sm:$0xff] }
 0x274   : > { %1969 = vmatprep.subr.bf16.mxu0 %v1335_v47  ;;  %2016 = vmatprep.subr.bf16.mxu1 %v1335_v47  ;;  %v1333_v61 = vpack.c.bf16 %v1290_v52, %v1289_v51  ;;  %v1234_v63 = vmul.f32 %v2696_v9, %v1217_v57  ;;  %v1269_v2 = vmul.f32 %v2700_v15, %v1252_v58  ;;  %v1298_v51 = vld [vmem:[%s2574_s0 + $0x8] sm:$0xff]  ;;  %v1303_v57 = vld [vmem:[%s2574_s0 + $0x30] sm:$0xff] }
 0x275   : > { %v1288_v1 = vadd.f32 %v1272_v56, %v1236_v55  ;;  %v1270_v3 = vmul.f32 %v2700_v15, %v1253_v59  ;;  %v1231_v7 = vmul.f32 %v2696_v9, %v1214_v0  ;;  %v1232_v8 = vmul.f32 %v2696_v9, %v1215_v4  ;;  %v1306_v52 = vld [vmem:[%s2574_s0 + $0x48] sm:$0xff]  ;;  %v1311_v58 = vld [vmem:[%s2574_s0 + $0x70] sm:$0xff]  ;;  %v1309_v0 = vld [vmem:[%s2574_s0 + $0x60] sm:$0xff] }
 0x276   : > { %v1267_v10 = vmul.f32 %v2700_v15, %v1250_v5  ;;  %v1268_v11 = vmul.f32 %v2700_v15, %v1251_v6  ;;  %v1285_v14 = vadd.f32 %v1269_v2, %v1233_v62  ;;  %v1229_v20 = vmul.f32 %v2696_v9, %v1212_v12  ;;  %v1304_v5 = vld [vmem:[%s2574_s0 + $0x38] sm:$0xff]  ;;  %v1302_v12 = vld [vmem:[%s2574_s0 + $0x28] sm:$0xff] }
 0x277   : > { %1970 = vmatpush3.bf16.msra.mxu0 %v1335_v47  ;;  %2024 = vmatpush3.bf16.msra.mxu1 %v1335_v47  ;;  %v1332_v13 = vpack.c.bf16 %v1288_v1, %v1287_v60  ;;  %v1286_v16 = vadd.f32 %v1270_v3, %v1234_v63  ;;  %v1230_v23 = vmul.f32 %v2696_v9, %v1213_v17  ;;  %v1301_v63 = vld [vmem:[%s2574_s0 + $0x20] sm:$0xff]  ;;  %v1312_v6 = vld [vmem:[%s2574_s0 + $0x78] sm:$0xff] }
 0x278   : > { %1971 = vmatprep.subr.bf16.mxu0 %v1334_v54  ;;  %2017 = vmatprep.subr.bf16.mxu1 %v1334_v54  ;;  %v1283_v21 = vadd.f32 %v1267_v10, %v1231_v7  ;;  %v1284_v22 = vadd.f32 %v1268_v11, %v1232_v8  ;;  %v1265_v25 = vmul.f32 %v2700_v15, %v1248_v18 }
 0x279   : > { %v1331_v24 = vpack.c.bf16 %v1286_v16, %v1285_v14  ;;  %v1266_v26 = vmul.f32 %v2700_v15, %v1249_v19  ;;  %v2197_v15 = vld [vmem:[%s2556_s14 + $0x8] sm:$0xff]  }
 0x27a   : > { %v1330_v27 = vpack.c.bf16 %v1284_v22, %v1283_v21  ;;  %v1281_v28 = vadd.f32 %v1265_v25, %v1229_v20 }
 0x27b   : > { %1972 = vmatpush3.bf16.msra.mxu0 %v1334_v54  ;;  %2025 = vmatpush3.bf16.msra.mxu1 %v1334_v54  ;;  %v1282_v29 = vadd.f32 %v1266_v26, %v1230_v23 }
 0x27c   : > { %1973 = vmatprep.subr.bf16.mxu0 %v1333_v61  ;;  %2018 = vmatprep.subr.bf16.mxu1 %v1333_v61 }
 0x27d   : > { %v1329_v9 = vpack.c.bf16 %v1282_v29, %v1281_v28 }
 0x27f   : > { %1974 = vmatpush3.bf16.msra.mxu0 %v1333_v61  ;;  %2026 = vmatpush3.bf16.msra.mxu1 %v1333_v61 }
 0x280   : > { %1975 = vmatprep.subr.bf16.mxu0 %v1332_v13  ;;  %2019 = vmatprep.subr.bf16.mxu1 %v1332_v13 }
 0x283   : > { %1976 = vmatpush3.bf16.msra.mxu0 %v1332_v13  ;;  %2027 = vmatpush3.bf16.msra.mxu1 %v1332_v13  ;;  %v1310_v13 = vld [vmem:[%s2574_s0 + $0x68] sm:$0xff] }
 0x284   : > { %1977 = vmatprep.subr.bf16.mxu0 %v1331_v24  ;;  %2020 = vmatprep.subr.bf16.mxu1 %v1331_v24 }
 0x287   : > { %1978 = vmatpush3.bf16.msra.mxu0 %v1331_v24  ;;  %2028 = vmatpush3.bf16.msra.mxu1 %v1331_v24 }
 0x288   : > { %1979 = vmatprep.subr.bf16.mxu0 %v1330_v27  ;;  %2021 = vmatprep.subr.bf16.mxu1 %v1330_v27 }
 0x28b   : > { %1980 = vmatpush3.bf16.msra.mxu0 %v1330_v27  ;;  %2029 = vmatpush3.bf16.msra.mxu1 %v1330_v27 }
 0x28c   : > { %1981 = vmatprep.subr.bf16.mxu0 %v1329_v9  ;;  %2022 = vmatprep.subr.bf16.mxu1 %v1329_v9 }
 0x28f   : > { %1982 = vmatpush3.bf16.msra.mxu0 %v1329_v9  ;;  %2030 = vmatpush3.bf16.msra.mxu1 %v1329_v9 }
 0x292   : > { %1984 = vmatmul.mubr.bf16.vlgmr.msra.gmra.mxu0 %v2197_v15  ;;  %1992 = vmatmul.mubr.bf16.vlgmr.msra.gmra.mxu1 %v2198_v30 }
 0x293   : > { %1987 = vmatprep.mubr.bf16.mxu0 %v2199_v31  ;;  %1995 = vmatprep.mubr.bf16.mxu1 %v2200_v32 }
 0x29a   : > { %1988 = vmatmul.mubr.bf16.gmra.mxu0 %v2201_v33  ;;  %1996 = vmatmul.mubr.bf16.gmra.mxu1 %v2202_v34 }
 0x352   : > { %v1985_v37 = vpop.f32.mrf.mxu0  ;;  %v1993_v38 = vpop.f32.mrf.mxu1 }
 0x353   : > { %v1484_v41 = vadd.f32 %v1985_v37, %v1299_v35  ;;  %v1492_v42 = vadd.f32 %v1993_v38, %v1307_v36 }
 0x354   : > { %v1419_v43 = vpop.f32.mrf.mxu0  ;;  %v1451_v44 = vpop.f32.mrf.mxu1 }
 0x355   : > { %1500 = vst [vmem:[%s2574_s0 + $0x10] sm:$0xff] %v1484_v41  ;;  %1508 = vst [vmem:[%s2574_s0 + $0x50] sm:$0xff] %v1492_v42  ;;  %v1482_v47 = vadd.f32 %v1419_v43, %v1297_v39  ;;  %v1490_v48 = vadd.f32 %v1451_v44, %v1305_v40 }
 0x356   : > { %v1986_v49 = vpop.f32.mrf.mxu0  ;;  %v1994_v50 = vpop.f32.mrf.mxu1 }
 0x357   : > { %1498 = vst [vmem:[%s2574_s0] sm:$0xff] %v1482_v47  ;;  %1506 = vst [vmem:[%s2574_s0 + $0x40] sm:$0xff] %v1490_v48  ;;  %v1485_v53 = vadd.f32 %v1986_v49, %v1300_v45  ;;  %v1493_v54 = vadd.f32 %v1994_v50, %v1308_v46 }
 0x358   : > { %v1422_v55 = vpop.f32.mrf.mxu0  ;;  %v1454_v56 = vpop.f32.mrf.mxu1 }
 0x359   : > { %1501 = vst [vmem:[%s2574_s0 + $0x18] sm:$0xff] %v1485_v53  ;;  %1509 = vst [vmem:[%s2574_s0 + $0x58] sm:$0xff] %v1493_v54  ;;  %v1483_v59 = vadd.f32 %v1422_v55, %v1298_v51  ;;  %v1491_v60 = vadd.f32 %v1454_v56, %v1306_v52 }
 0x35a   : > { %v1989_v61 = vpop.f32.mrf.mxu0  ;;  %v1997_v62 = vpop.f32.mrf.mxu1 }
 0x35b   : > { %1499 = vst [vmem:[%s2574_s0 + $0x8] sm:$0xff] %v1483_v59  ;;  %1507 = vst [vmem:[%s2574_s0 + $0x48] sm:$0xff] %v1491_v60  ;;  %v1488_v1 = vadd.f32 %v1989_v61, %v1303_v57  ;;  %v1496_v2 = vadd.f32 %v1997_v62, %v1311_v58 }
 0x35c   : > { %v1435_v3 = vpop.f32.mrf.mxu0  ;;  %v1467_v4 = vpop.f32.mrf.mxu1 }
 0x35d   : > { %1504 = vst [vmem:[%s2574_s0 + $0x30] sm:$0xff] %v1488_v1  ;;  %1512 = vst [vmem:[%s2574_s0 + $0x70] sm:$0xff] %v1496_v2  ;;  %v1486_v7 = vadd.f32 %v1435_v3, %v1301_v63  ;;  %v1494_v8 = vadd.f32 %v1467_v4, %v1309_v0 }
 0x35e   : > { %v1990_v10 = vpop.f32.mrf.mxu0  ;;  %v1998_v11 = vpop.f32.mrf.mxu1 }
 0x35f   : > { %1502 = vst [vmem:[%s2574_s0 + $0x20] sm:$0xff] %v1486_v7  ;;  %1510 = vst [vmem:[%s2574_s0 + $0x60] sm:$0xff] %v1494_v8  ;;  %v1489_v14 = vadd.f32 %v1990_v10, %v1304_v5  ;;  %v1497_v16 = vadd.f32 %v1998_v11, %v1312_v6  ;;  %1519 = sbr.rel (%p2742_p8) target bundleno = 879 (0x36f), region = 105 }
 0x360   : > { %v1438_v17 = vpop.f32.mrf.mxu0  ;;  %v1470_v18 = vpop.f32.mrf.mxu1 }
 0x361   : > { %1505 = vst [vmem:[%s2574_s0 + $0x38] sm:$0xff] %v1489_v14  ;;  %1513 = vst [vmem:[%s2574_s0 + $0x78] sm:$0xff] %v1497_v16  ;;  %v1487_v19 = vadd.f32 %v1438_v17, %v1302_v12  ;;  %v1495_v20 = vadd.f32 %v1470_v18, %v1310_v13 }
 0x363   : > { %1503 = vst [vmem:[%s2574_s0 + $0x28] sm:$0xff] %v1487_v19  ;;  %1511 = vst [vmem:[%s2574_s0 + $0x68] sm:$0xff] %v1495_v20 }
 0x364   : > { %v1520_v21 = vld [vmem:[%s2574_s0] sm:$0xff]  ;;  %v1521_v22 = vld [vmem:[%s2574_s0 + $0x8] sm:$0xff]  ;;  %v1522_v23 = vld [vmem:[%s2574_s0 + $0x10] sm:$0xff] }
 0x365   : > { %v1536_v24 = vmax.f32 %v1520_v21, 0.0  ;;  %v1537_v25 = vmax.f32 %v1521_v22, 0.0  ;;  %v1538_v26 = vmax.f32 %v1522_v23, 0.0  ;;  %v1523_v27 = vld [vmem:[%s2574_s0 + $0x18] sm:$0xff]  ;;  %v1526_v31 = vld [vmem:[%s2574_s0 + $0x30] sm:$0xff]  ;;  %v1528_v33 = vld [vmem:[%s2574_s0 + $0x40] sm:$0xff] }
 0x366   : > { %v1524_v28 = vld [vmem:[%s2574_s0 + $0x20] sm:$0xff]  ;;  %v1539_v9 = vmax.f32 %v1523_v27, 0.0  ;;  %v1542_v34 = vmax.f32 %v1526_v31, 0.0  ;;  %v1544_v36 = vmax.f32 %v1528_v33, 0.0  ;;  %v1529_v37 = vld [vmem:[%s2574_s0 + $0x48] sm:$0xff]  ;;  %v1530_v38 = vld [vmem:[%s2574_s0 + $0x50] sm:$0xff] }
 0x367   : > { %v1540_v15 = vmax.f32 %v1524_v28, 0.0  ;;  %1552 = vst [vmem:[%s2574_s0] sm:$0xff] %v1536_v24  ;;  %1553 = vst [vmem:[%s2574_s0 + $0x8] sm:$0xff] %v1537_v25  ;;  %v1531_v39 = vld [vmem:[%s2574_s0 + $0x58] sm:$0xff]  ;;  %v1545_v40 = vmax.f32 %v1529_v37, 0.0  ;;  %v1546_v41 = vmax.f32 %v1530_v38, 0.0  ;;  %v1532_v43 = vld [vmem:[%s2574_s0 + $0x60] sm:$0xff] }
 0x368   : > { %v1527_v32 = vld [vmem:[%s2574_s0 + $0x38] sm:$0xff]  ;;  %1554 = vst [vmem:[%s2574_s0 + $0x10] sm:$0xff] %v1538_v26  ;;  %1555 = vst [vmem:[%s2574_s0 + $0x18] sm:$0xff] %v1539_v9  ;;  %v1547_v42 = vmax.f32 %v1531_v39, 0.0  ;;  %v1534_v45 = vld [vmem:[%s2574_s0 + $0x70] sm:$0xff]  ;;  %v1548_v46 = vmax.f32 %v1532_v43, 0.0 }
 0x369   : > { %v1543_v35 = vmax.f32 %v1527_v32, 0.0  ;;  %1556 = vst [vmem:[%s2574_s0 + $0x20] sm:$0xff] %v1540_v15  ;;  %1558 = vst [vmem:[%s2574_s0 + $0x30] sm:$0xff] %v1542_v34  ;;  %v1550_v48 = vmax.f32 %v1534_v45, 0.0  ;;  %v1535_v49 = vld [vmem:[%s2574_s0 + $0x78] sm:$0xff] }
 0x36a   : > { %v1525_v29 = vld [vmem:[%s2574_s0 + $0x28] sm:$0xff]  ;;  %1560 = vst [vmem:[%s2574_s0 + $0x40] sm:$0xff] %v1544_v36  ;;  %1561 = vst [vmem:[%s2574_s0 + $0x48] sm:$0xff] %v1545_v40  ;;  %v1551_v50 = vmax.f32 %v1535_v49, 0.0 }
 0x36b   : > { %v1541_v30 = vmax.f32 %v1525_v29, 0.0  ;;  %v1533_v44 = vld [vmem:[%s2574_s0 + $0x68] sm:$0xff]  ;;  %1559 = vst [vmem:[%s2574_s0 + $0x38] sm:$0xff] %v1543_v35  ;;  %1562 = vst [vmem:[%s2574_s0 + $0x50] sm:$0xff] %v1546_v41 }
 0x36c   : > { %v1549_v47 = vmax.f32 %v1533_v44, 0.0  ;;  %1563 = vst [vmem:[%s2574_s0 + $0x58] sm:$0xff] %v1547_v42  ;;  %1564 = vst [vmem:[%s2574_s0 + $0x60] sm:$0xff] %v1548_v46 }
 0x36d   : > { %1557 = vst [vmem:[%s2574_s0 + $0x28] sm:$0xff] %v1541_v30  ;;  %1566 = vst [vmem:[%s2574_s0 + $0x70] sm:$0xff] %v1550_v48 }
 0x36e   : > { %1565 = vst [vmem:[%s2574_s0 + $0x68] sm:$0xff] %v1549_v47  ;;  %1567 = vst [vmem:[%s2574_s0 + $0x78] sm:$0xff] %v1551_v50 }
 0x36f PF: > { %s2924_s29 = sld [smem:[#allocation13_spill]]  ;;  %s1806_s30 = sshll.u32 %s2330_s8, 11 }
 0x370   : > { %s2925_s7 = sld [smem:[#allocation19_spill]]  ;;  %s1582_s15 = sshll.u32 %s2574_s0, 4  ;;  %s2819_s15 = int_to_ptr.vmem [resolvable:$true] %s1582_s15 }
 0x371   : > { %s2926_s19 = sand.u32 1, %s2306_s25   ;;  %s2218_s24 = scalar_lea.vmem %s2819_s15, 2048 }
 0x372   : > { %s2823_s23 = scalar_lea.sflag [#allocation4], %s2926_s19  ;;  %p2219_p10 = scmp.ne.s32.totalorder %s2819_s15, %s2218_s24 }
 0x373   : > { %s2349_s8 = smov [#allocation7]  }
 0x374   : > { %s2222_s27 = sshll.u32 %s2349_s8, 4  ;;  %s2223_s27 = int_to_ptr.vmem [resolvable:$false] %s2222_s27 }
 0x375   : > { %p2927_p12 = scmp.ne.s32.totalorder %s2924_s29, 0  ;;  %s2224_s21 = scalar_lea.vmem %s2223_s27, 4096 }
 0x376   : > { %s2816_s16 = scalar_lea.hbm %s2925_s7, %s1806_s30  ;;  %p2225_p2 = scmp.lt.s32.totalorder %s2819_s15, %s2223_s27 }
 0x377   : > { %p2220_p13 = pnand %p2219_p10, %p2927_p12  ;;  %p2226_p4 = scmp.lt.s32.totalorder %s2224_s21, %s2218_s24 }
 0x379   : > { %p2221_p0 = pneg %p2220_p13  ;;  %p2227_p9 = por %p2226_p4, %p2225_p2 }
 0x37b   : > { %p2228_p11 = pnand %p2227_p9, %p2221_p0 }
 0x37d   : > { %2231 = shalt.err (!%p2228_p11)
}
 0x37e   : > { %s2232_s0 = scalar_lea.hbm %s2816_s16, 2048  ;;  %s2236_s18 = scalar_lea.hbm %s2925_s7, 4096 }
 0x37f   : > { %p2233_p1 = scmp.ne.s32.totalorder %s2816_s16, %s2232_s0  ;;  %p2237_p6 = scmp.lt.s32.totalorder %s2816_s16, %s2925_s7 }
 0x380   : > { %p2238_p7 = scmp.lt.s32.totalorder %s2236_s18, %s2232_s0 }
 0x381   : > { %p2234_p3 = pnand %p2233_p1, %p2927_p12 }
 0x382   : > { %p2239_p8 = por %p2238_p7, %p2237_p6 }
 0x383   : > { %p2235_p5 = pneg %p2234_p3 }
 0x385   : > { %p2240_p10 = pnand %p2239_p8, %p2235_p5 }
 0x387   : > { %2243 = shalt.err (!%p2240_p10)
}
 0x388   : > { %s2350_s14 = smov 128   ;;  %s2351_s13 = smov 8  }
 0x389   : > { %2035 = dma.vmem_to_hbm [thread:$0]  (%p2927_p12), %s2819_s15, 2048, %s2816_s16, %s2823_s23, %s2350_s14, %s2350_s14, %s2351_s13  }
 0x38a PF: > { %s2928_s19 = sld [smem:[#allocation10_spill]]  ;;  %p2047_p13 = scmp.ge.s32.totalorder %s2346_s12, 2 }
 0x38b   : > { %s2929_s24 = sld [smem:[#allocation15_spill]] }
 0x390   : > { %s1597_s8 = sand.u32 1, %s2928_s19  }
 0x391   : > { %p2930_p0 = scmp.ne.s32.totalorder %s2929_s24, 0  ;;  %s1598_s27 = scalar_lea.sflag [#allocation4], %s1597_s8 }
 0x393   : > { %p2042_p2 = pnand %p2047_p13, %p2930_p0 }
 0x395   : > { %p2043_p4 = pneg %p2042_p2 }
 0x397   : > { %2297 = dma.done.wait (%p2043_p4), %s1598_s27, 2048  }
 0x398   : > { %2299 = vsyncadd (%p2043_p4), %s1598_s27, 4294965248  ;;  %s21_s12 = sadd.s32 1, %s2346_s12   ;;  %s2931_s21 = sld [smem:[#allocation16_spill]] }
 0x399   : > { %p18_p9 = scmp.ge.s32.totalorder %s21_s12, 14   ;;  %s2932_s29 = sld [smem:[#allocation17_spill]] }
 0x39a   : > { %s2933_s16 = sld [smem:[#allocation11_spill]]  ;;  %s2936_s24 = smov %s2306_s25 }
 0x39b   : > { %s2934_s15 = sld [smem:[#allocation12_spill]]  ;;  %s2937_s25 = smov %s2310_s26 }
 0x39c   : > { %s2935_s23 = sld [smem:[#allocation14_spill]]  ;;  %s2939_s27 = smov %s2318_s28 }
 0x39d   : > { %s2942_s30 = smov %s2338_s10  ;;  %s2943_s8 = smov %s2342_s11 }
 0x39e   : > { %s2938_s26 = smov %s2931_s21  ;;  %20 = sbr.rel (!%p18_p9) target bundleno = 11 (0xb), region = 155 }
 0x39f   : > { %s2940_s28 = smov %s2932_s29  ;;  %s2941_s29 = smov %s2334_s9 }
 0x3a0   : > { %s2944_s9 = smov %s2933_s16 }
 0x3a1   : > { %s2945_s10 = smov %s2934_s15 }
 0x3a2   : > { %s2946_s11 = smov %s2935_s23 }
 0x3a3   :  { %1603 = vsyncpa [#allocation4], 1 }
 0x3a4   :  { %1605 = vsyncpa [#allocation4 + $0x1], 1 }
 0x3a5   :  { %1606 = vsyncpa [#allocation5], 1 }
 0x3a6   :  { %1608 = vsyncpa [#allocation5 + $0x1], 1 }

</bundles_post_ra>
